<compile_context>
chip_gen: v5e
topology: v5e:2x2
jax: 0.10.0
libtpu: 0.0.40
codegen_flags: <defaults>
</compile_context>

<pallas_src>
import functools

import jax
import jax.numpy as jnp
import numpy as np
from jax import lax
from jax.experimental import pallas as pl
from jax.experimental.pallas import tpu as pltpu


def _round_up(n, m):
    return ((n + m - 1) // m) * m


def schnet_output_kernel(idx_ref, x_ref, w1_ref, b1_ref, w2_ref, b2_ref, y_ref, *,
                         total_atoms, tile_n, tiles_per_core, matmul_dtype):
    """One atom tile: hidden Dense + SiLU, 1-wide Dense, per-molecule scatter accumulation."""
    c = pl.program_id(0)                     # core axis ("parallel")
    i = pl.program_id(1)                     # tile axis for this core ("arbitrary", accumulated)
    mp = y_ref.shape[-1]                     # molecule axis padded to a multiple of 128

    # Zero the per-core accumulator at the start of this core's tile loop.
    @pl.when(i == 0)
    def _():
        y_ref[...] = jnp.zeros_like(y_ref)

    # ---- Dense(n_in -> n_hidden) on the MXU: f32 streamed from HBM, cast to bf16 in-kernel ----
    x_mm = x_ref[...].astype(matmul_dtype)                                   # (TN, D)
    h = jnp.dot(x_mm, w1_ref[...], preferred_element_type=jnp.float32)       # (TN, H) f32 acc
    h = h + b1_ref[...]
    h = h * jax.nn.sigmoid(h)                                                # SiLU (VPU + EUP)
    # TODO(synk): nn.Dropout(p=0.1) train-mode masking not implemented; inference (identity) used.

    # ---- Dense(n_hidden -> 1): VPU multiply + lane reduce against the (1, H) W2 row ----
    y_atom = jnp.sum(h * w2_ref[...], axis=-1, keepdims=True) + b2_ref[0]    # (TN, 1)

    # Mask rows past the end of the atom array (padded last tile / overhang tiles).
    tile_idx = c * tiles_per_core + i
    row = lax.broadcasted_iota(jnp.int32, (tile_n, 1), 0) + tile_idx * tile_n
    y_atom = jnp.where(row < total_atoms, y_atom, 0.0)

    # ---- scatter_add over molecules ----
    # Onehot from a single (1, mp) iota row (no (TN, mp) iota materialized); atoms with
    # idx_m >= maxm simply match no column and are dropped (inputs must satisfy 0 <= idx_m < maxm).
    mol_row = lax.broadcasted_iota(jnp.int32, (1, mp), 1)
    onehot = (idx_ref[...] == mol_row).astype(jnp.float32)                   # (TN, mp), exact 0/1
    partial = lax.dot_general(y_atom, onehot, (((0,), (0,)), ((), ())),
                              preferred_element_type=jnp.float32)            # (1, mp) lane-dense
    y_ref[...] += partial[None]


def schnet_output_forward(x, idx_m, n_atoms, params, *, tile_n=1024, num_cores=2,
                          matmul_dtype=jnp.bfloat16):
    """
    x       : (N_atoms, n_in) f32   scalar_representation
    idx_m   : (N_atoms,) int32      molecule index of each atom (sorted, 0 <= idx < maxm)
    n_atoms : (maxm,) int32         number of atoms per molecule
    params  : (w1 (D,H), b1 (1,H), w2 (H,1), b2 (1,))  -- torch Linear (out,in) stored (in,out)
    """
    w1, b1, w2, b2 = params
    n, d = x.shape
    n_hidden = w1.shape[1]
    maxm = n_atoms.shape[0]                          # static molecule count (no host sync)
    mp = _round_up(max(maxm, 1), 128)                # lane-dense padded molecule axis

    # Tile the atom axis in multiples of 128 (clean sublane packing, amortized grid overhead).
    tile_n = max(128, _round_up(min(int(tile_n), _round_up(n, 128)), 128))
    n_tiles = pl.cdiv(n, tile_n)
    num_cores = int(max(1, min(int(num_cores), n_tiles)))
    tiles_per_core = pl.cdiv(n_tiles, num_cores)

    # Small/resident operands only are pre-cast; x stays f32 and is cast in-kernel.
    w1_mm = w1.astype(matmul_dtype)
    b1_f = b1.reshape(1, n_hidden).astype(jnp.float32)
    w2_row = w2.reshape(1, n_hidden).astype(jnp.float32)      # lane-dense row for the VPU reduce
    b2_s = b2.reshape(1).astype(jnp.float32)
    idx_col = idx_m.reshape(n, 1).astype(jnp.int32)
    x_f = x.astype(jnp.float32)

    def tile_block(c, i):
        # Clamp overhang tiles (when n_tiles % num_cores != 0) to a valid block; their rows are
        # masked inside the kernel so they contribute zero.
        return jnp.minimum(c * tiles_per_core + i, n_tiles - 1)

    kernel = functools.partial(schnet_output_kernel, total_atoms=n, tile_n=tile_n,
                               tiles_per_core=tiles_per_core, matmul_dtype=matmul_dtype)

    cost = pl.CostEstimate(
        flops=int(2 * n * d * n_hidden + 4 * n * n_hidden + 2 * n * mp),
        transcendentals=int(n * n_hidden),
        bytes_accessed=int(n * d * 4 + n * 4 + d * n_hidden * 2
                           + (2 * n_hidden + 1) * 4 + num_cores * mp * 4),
    )

    y_acc = pl.pallas_call(
        kernel,
        out_shape=jax.ShapeDtypeStruct((num_cores, 1, mp), jnp.float32),
        grid=(num_cores, tiles_per_core),
        in_specs=[
            pl.BlockSpec((tile_n, 1), lambda c, i: (tile_block(c, i), 0)),   # idx_m column
            pl.BlockSpec((tile_n, d), lambda c, i: (tile_block(c, i), 0)),   # x tile (f32, pipelined)
            pl.BlockSpec((d, n_hidden), lambda c, i: (0, 0)),                # W1 (bf16, resident)
            pl.BlockSpec((1, n_hidden), lambda c, i: (0, 0)),                # b1 (resident)
            pl.BlockSpec((1, n_hidden), lambda c, i: (0, 0)),                # W2 row (resident)
            pl.BlockSpec(memory_space=pltpu.MemorySpace.SMEM),               # b2 scalar in SMEM
        ],
        out_specs=pl.BlockSpec((1, 1, mp), lambda c, i: (c, 0, 0)),          # per-core accumulator
        compiler_params=pltpu.CompilerParams(
            dimension_semantics=("parallel", "arbitrary"),                   # core axis shardable (v7x)
            vmem_limit_bytes=32 * 1024 * 1024,                               # safe on v5e/v6e/v7x
        ),
        cost_estimate=cost,
    )(idx_col, x_f, w1_mm, b1_f, w2_row, b2_s)

    # ---- aggregation glue (mirrors the torch source) ----
    y_mol = jnp.sum(y_acc[:, 0, :maxm], axis=0)                 # scatter_add(...).squeeze(-1)
    # aggregation_mode == 'avg':  y / n_atoms.unsqueeze(1)
    # The torch source broadcasts (maxm,) against (maxm, 1) -> (maxm, maxm); reproduced literally
    # to preserve the module's forward semantics.
    # TODO(synk): the intended per-molecule average would be elementwise y_mol / n_atoms (maxm,).
    y = y_mol / n_atoms[:, None].astype(jnp.float32)
    y = jnp.squeeze(y)                                          # torch.squeeze(y)
    return {"y": y}


def _reference(x, idx_m, n_atoms, params, matmul_dtype=jnp.bfloat16):
    """Pure-JAX reference matching the kernel's numerics (bf16 operands for x @ W1, f32 elsewhere)."""
    w1, b1, w2, b2 = params
    h = jnp.dot(x.astype(matmul_dtype), w1.astype(matmul_dtype),
                preferred_element_type=jnp.float32) + b1.reshape(1, -1)
    h = h * jax.nn.sigmoid(h)
    y_atom = jnp.sum(h * w2.reshape(1, -1), axis=-1) + b2[0]                 # (N,)
    maxm = n_atoms.shape[0]
    y_mol = jax.ops.segment_sum(y_atom, idx_m, num_segments=maxm)
    y = y_mol / n_atoms[:, None].astype(jnp.float32)
    return jnp.squeeze(y)


if __name__ == "__main__":
    key = jax.random.PRNGKey(0)

    def make_case(case_key, counts, n_in, n_hidden):
        counts = np.asarray(counts, dtype=np.int32)
        n = int(counts.sum())
        n_mol = int(counts.shape[0])
        k_x, k_w1, k_b1, k_w2, k_b2 = jax.random.split(case_key, 5)
        x = jax.random.normal(k_x, (n, n_in), dtype=jnp.float32)
        idx_m = jnp.asarray(np.repeat(np.arange(n_mol, dtype=np.int32), counts))   # sorted
        n_atoms = jnp.asarray(counts)
        # torch nn.Linear weights (out, in) stored transposed as (in, out).
        w1 = 0.1 * jax.random.normal(k_w1, (n_in, n_hidden), dtype=jnp.float32)
        b1 = 0.1 * jax.random.normal(k_b1, (1, n_hidden), dtype=jnp.float32)
        w2 = 0.1 * jax.random.normal(k_w2, (n_hidden, 1), dtype=jnp.float32)
        b2 = 0.1 * jax.random.normal(k_b2, (1,), dtype=jnp.float32)
        return x, idx_m, n_atoms, (w1, b1, w2, b2)

    k1, k2 = jax.random.split(key)

    # Case 1: tiny (24 atoms, n_in=32, hidden=16, 4 molecules) -> single tile, single core.
    x, idx_m, n_atoms, params = make_case(k1, [6, 6, 6, 6], 32, 16)
    fwd = jax.jit(functools.partial(schnet_output_forward, tile_n=128))
    out = fwd(x, idx_m, n_atoms, params)
    jax.block_until_ready(out)
    np.testing.assert_allclose(np.asarray(out["y"]),
                               np.asarray(_reference(x, idx_m, n_atoms, params)),
                               rtol=5e-3, atol=1e-3)

    # Case 2: 300 atoms, uneven molecules, n_in=64, hidden=32, tile_n=128, num_cores=2 ->
    # grid (2, 2) with a partial last tile and one overhang tile (exercises clamping + masking
    # + the per-core accumulator reduction).
    x, idx_m, n_atoms, params = make_case(k2, [70, 50, 80, 60, 40], 64, 32)
    fwd2 = jax.jit(functools.partial(schnet_output_forward, tile_n=128, num_cores=2))
    out2 = fwd2(x, idx_m, n_atoms, params)
    jax.block_until_ready(out2)
    np.testing.assert_allclose(np.asarray(out2["y"]),
                               np.asarray(_reference(x, idx_m, n_atoms, params)),
                               rtol=5e-3, atol=1e-3)

    print("KERNEL_OK")
</pallas_src>

<mosaic_0001>
module attributes {stable_mosaic.version = 11 : i64} {
  func.func @schnet_output_kernel(%arg0: i32, %arg1: i32, %arg2: memref<128x1xi32, #tpu.memory_space<vmem>>, %arg3: memref<128x32xf32, #tpu.memory_space<vmem>>, %arg4: memref<32x16xbf16, #tpu.memory_space<vmem>>, %arg5: memref<1x16xf32, #tpu.memory_space<vmem>>, %arg6: memref<1x16xf32, #tpu.memory_space<vmem>>, %arg7: memref<1xf32, #tpu.memory_space<smem>>, %arg8: memref<1x1x128xf32, #tpu.memory_space<vmem>>) attributes {dimension_semantics = [#tpu.dimension_semantics<parallel>, #tpu.dimension_semantics<arbitrary>], iteration_bounds = array<i64: 1, 1>, scalar_prefetch = 0 : i64, scratch_operands = 0 : i64, tpu.core_type = #tpu.core_type<tc>, window_params = [{transform_indices = @transform_0, window_bounds = array<i64: 128, 1>}, {transform_indices = @transform_1, window_bounds = array<i64: 128, 32>}, {pipeline_mode = #tpu.pipeline_mode<synchronous>, transform_indices = @transform_2, window_bounds = array<i64: 32, 16>}, {pipeline_mode = #tpu.pipeline_mode<synchronous>, transform_indices = @transform_3, window_bounds = array<i64: 1, 16>}, {pipeline_mode = #tpu.pipeline_mode<synchronous>, transform_indices = @transform_4, window_bounds = array<i64: 1, 16>}, {transform_indices = @transform_5, window_bounds = array<i64: 1>}, {transform_indices = @transform_6, window_bounds = array<i64: 1, 1, 128>}]} {
    %c0_i32 = arith.constant 0 : i32
    %0 = arith.cmpi eq, %arg1, %c0_i32 : i32
    %1 = arith.extui %0 : i1 to i32
    %c0_i32_0 = arith.constant 0 : i32
    %2 = arith.cmpi ne, %1, %c0_i32_0 : i32
    scf.if %2 {
      %cst_21 = arith.constant 0.000000e+00 : f32
      %46 = vector.broadcast %cst_21 : f32 to vector<1x1x128xf32>
      %c0_22 = arith.constant 0 : index
      %c0_23 = arith.constant 0 : index
      %c0_24 = arith.constant 0 : index
      %47 = vector.load %arg8[%c0_22, %c0_23, %c0_24] : memref<1x1x128xf32, #tpu.memory_space<vmem>>, vector<1x1x128xf32>
      tpu.vector_store %arg8[%c0_22, %c0_23, %c0_24], %46 {strides = array<i32>} : memref<1x1x128xf32, #tpu.memory_space<vmem>>, vector<1x1x128xf32>,
    } else {
    }
    %c0 = arith.constant 0 : index
    %c0_1 = arith.constant 0 : index
    %3 = vector.load %arg3[%c0, %c0_1] : memref<128x32xf32, #tpu.memory_space<vmem>>, vector<128x32xf32>
    %4 = arith.truncf %3 : vector<128x32xf32> to vector<128x32xbf16>
    %c0_2 = arith.constant 0 : index
    %c0_3 = arith.constant 0 : index
    %5 = vector.load %arg4[%c0_2, %c0_3] : memref<32x16xbf16, #tpu.memory_space<vmem>>, vector<32x16xbf16>
    %cst = arith.constant dense<0.000000e+00> : vector<128x16xf32>
    %6 = tpu.matmul %4, %5, %cst {dimension_numbers = #tpu.dot_dimension_numbers<[1], [0], [0], [1], [0, 0, 1, 1], [], []>} : vector<128x32xbf16>, vector<32x16xbf16>, vector<128x16xf32> -> vector<128x16xf32>
    %c0_4 = arith.constant 0 : index
    %c0_5 = arith.constant 0 : index
    %7 = vector.load %arg5[%c0_4, %c0_5] : memref<1x16xf32, #tpu.memory_space<vmem>>, vector<1x16xf32>
    %8 = vector.broadcast %7 : vector<1x16xf32> to vector<128x16xf32>
    %9 = arith.addf %6, %8 : vector<128x16xf32>
    %10 = arith.negf %9 : vector<128x16xf32>
    %11 = math.exp %10 : vector<128x16xf32>
    %cst_6 = arith.constant 1.000000e+00 : f32
    %12 = vector.broadcast %cst_6 : f32 to vector<128x16xf32>
    %13 = arith.addf %12, %11 : vector<128x16xf32>
    %14 = arith.divf %12, %13 : vector<128x16xf32>
    %15 = arith.mulf %9, %14 : vector<128x16xf32>
    %c0_7 = arith.constant 0 : index
    %c0_8 = arith.constant 0 : index
    %16 = vector.load %arg6[%c0_7, %c0_8] : memref<1x16xf32, #tpu.memory_space<vmem>>, vector<1x16xf32>
    %17 = vector.broadcast %16 : vector<1x16xf32> to vector<128x16xf32>
    %18 = arith.mulf %15, %17 : vector<128x16xf32>
    %cst_9 = arith.constant dense<0.000000e+00> : vector<128xf32>
    %19 = vector.multi_reduction <add>, %18, %cst_9 [1] : vector<128x16xf32> to vector<128xf32>
    %20 = vector.shape_cast %19 : vector<128xf32> to vector<128x1xf32>
    %c0_10 = arith.constant 0 : index
    %21 = memref.load %arg7[%c0_10] : memref<1xf32, #tpu.memory_space<smem>>
    %22 = vector.broadcast %21 : f32 to vector<128x1xf32>
    %23 = arith.addf %20, %22 : vector<128x1xf32>
    %c1_i32 = arith.constant 1 : i32
    %24 = arith.muli %arg0, %c1_i32 : i32
    %25 = arith.addi %24, %arg1 : i32
    %26 = tpu.iota {dimensions = array<i32: 0>} : vector<128x1xi32>
    %c128_i32 = arith.constant 128 : i32
    %27 = arith.muli %25, %c128_i32 : i32
    %28 = vector.broadcast %27 : i32 to vector<128x1xi32>
    %29 = arith.addi %26, %28 : vector<128x1xi32>
    %c24_i32 = arith.constant 24 : i32
    %30 = vector.broadcast %c24_i32 : i32 to vector<128x1xi32>
    %31 = arith.cmpi slt, %29, %30 : vector<128x1xi32>
    %cst_11 = arith.constant 0.000000e+00 : f32
    %32 = vector.broadcast %cst_11 : f32 to vector<128x1xf32>
    %33 = arith.select %31, %23, %32 : vector<128x1xi1>, vector<128x1xf32>
    %34 = tpu.iota {dimensions = array<i32: 1>} : vector<1x128xi32>
    %c0_12 = arith.constant 0 : index
    %c0_13 = arith.constant 0 : index
    %35 = vector.load %arg2[%c0_12, %c0_13] : memref<128x1xi32, #tpu.memory_space<vmem>>, vector<128x1xi32>
    %36 = vector.broadcast %35 : vector<128x1xi32> to vector<128x128xi32>
    %37 = vector.broadcast %34 : vector<1x128xi32> to vector<128x128xi32>
    %38 = arith.cmpi eq, %36, %37 : vector<128x128xi32>
    %39 = arith.extui %38 : vector<128x128xi1> to vector<128x128xi32>
    %40 = arith.sitofp %39 : vector<128x128xi32> to vector<128x128xf32>
    %cst_14 = arith.constant dense<0.000000e+00> : vector<1x128xf32>
    %41 = tpu.matmul %33, %40, %cst_14 {dimension_numbers = #tpu.dot_dimension_numbers<[0], [0], [1], [1], [0, 1, 1, 1], [], []>} : vector<128x1xf32>, vector<128x128xf32>, vector<1x128xf32> -> vector<1x128xf32>
    %c0_15 = arith.constant 0 : index
    %c0_16 = arith.constant 0 : index
    %c0_17 = arith.constant 0 : index
    %42 = vector.load %arg8[%c0_15, %c0_16, %c0_17] : memref<1x1x128xf32, #tpu.memory_space<vmem>>, vector<1x1x128xf32>
    %43 = vector.shape_cast %41 : vector<1x128xf32> to vector<1x1x128xf32>
    %44 = arith.addf %42, %43 : vector<1x1x128xf32>
    %c0_18 = arith.constant 0 : index
    %c0_19 = arith.constant 0 : index
    %c0_20 = arith.constant 0 : index
    %45 = vector.load %arg8[%c0_18, %c0_19, %c0_20] : memref<1x1x128xf32, #tpu.memory_space<vmem>>, vector<1x1x128xf32>
    tpu.vector_store %arg8[%c0_18, %c0_19, %c0_20], %44 {strides = array<i32>} : memref<1x1x128xf32, #tpu.memory_space<vmem>>, vector<1x1x128xf32>,
    return
  }
  func.func @transform_0(%arg0: i32, %arg1: i32) -> (i32, i32) {
    %c1_i32 = arith.constant 1 : i32
    %0 = arith.muli %arg0, %c1_i32 : i32
    %1 = arith.addi %0, %arg1 : i32
    %c0_i32 = arith.constant 0 : i32
    %2 = arith.minsi %1, %c0_i32 : i32
    %c0_i32_0 = arith.constant 0 : i32
    %c0_i32_1 = arith.constant 0 : i32
    return %2, %c0_i32_0 : i32, i32
  }
  func.func @transform_1(%arg0: i32, %arg1: i32) -> (i32, i32) {
    %c1_i32 = arith.constant 1 : i32
    %0 = arith.muli %arg0, %c1_i32 : i32
    %1 = arith.addi %0, %arg1 : i32
    %c0_i32 = arith.constant 0 : i32
    %2 = arith.minsi %1, %c0_i32 : i32
    %c0_i32_0 = arith.constant 0 : i32
    %c0_i32_1 = arith.constant 0 : i32
    return %2, %c0_i32_0 : i32, i32
  }
  func.func @transform_2(%arg0: i32, %arg1: i32) -> (i32, i32) {
    %c0_i32 = arith.constant 0 : i32
    %c0_i32_0 = arith.constant 0 : i32
    %c0_i32_1 = arith.constant 0 : i32
    return %c0_i32, %c0_i32_0 : i32, i32
  }
  func.func @transform_3(%arg0: i32, %arg1: i32) -> (i32, i32) {
    %c0_i32 = arith.constant 0 : i32
    %c0_i32_0 = arith.constant 0 : i32
    %c0_i32_1 = arith.constant 0 : i32
    return %c0_i32, %c0_i32_0 : i32, i32
  }
  func.func @transform_4(%arg0: i32, %arg1: i32) -> (i32, i32) {
    %c0_i32 = arith.constant 0 : i32
    %c0_i32_0 = arith.constant 0 : i32
    %c0_i32_1 = arith.constant 0 : i32
    return %c0_i32, %c0_i32_0 : i32, i32
  }
  func.func @transform_5(%arg0: i32, %arg1: i32) -> i32 {
    %c0_i32 = arith.constant 0 : i32
    %c0_i32_0 = arith.constant 0 : i32
    return %c0_i32 : i32
  }
  func.func @transform_6(%arg0: i32, %arg1: i32) -> (i32, i32, i32) {
    %c0_i32 = arith.constant 0 : i32
    %c0_i32_0 = arith.constant 0 : i32
    %c0_i32_1 = arith.constant 0 : i32
    return %arg0, %c0_i32, %c0_i32_0 : i32, i32, i32
  }
}

</mosaic_0001>

<bundles_post_ra>
// kernel: schnet_output_forward.1
= control target key start
LH: loop header
LB: loop body
LE: loop exit
PB: predicated region body
PF: predicated region fallthrough
CT: control target
= control target key end

     0   :  { %v987_v2 = vmov 0   ;;  %vm158_vm0 = vcmask 261120   ;;  %v707_v25 = vlaneseq  ;;  %v988_v30 = vmov 1.0   ;;  %s1202_s2 = inlined_call_operand.vmem [shape: bf16[32,16], index: 2, kind: input, shape index: {}]   ;;  %s1203_s1 = inlined_call_operand.vmem [shape: f32[24,32], index: 1, kind: input, shape index: {}]   ;;  %s1204_s0 = inlined_call_operand.vmem [shape: s32[24,1], index: 0, kind: input, shape index: {}]   ;;  %s1205_s3 = inlined_call_operand.vmem [shape: f32[1,16], index: 3, kind: input, shape index: {}]   ;;  %s1206_s4 = inlined_call_operand.vmem [shape: f32[1,16], index: 4, kind: input, shape index: {}]   ;;  %s1207_s5 = inlined_call_operand.<no memory space> [shape: f32[1], index: 5, kind: input, shape index: {}]   ;;  %s1208_s6 = inlined_call_operand.vmem [shape: f32[1,1,128], index: 6, kind: output, shape index: {}]  }
   0x1   :  { %v957_v0 = vld [vmem:[%s1202_s2 + $0x8] sm:$0xff]  ;;  %v956_v1 = vld [vmem:[%s1202_s2] sm:$0xff]  ;;  %971 = vset.pattern.permute.xlu1 %v987_v2  ;;  %970 = vset.pattern.permute.xlu0 %v987_v2  ;;  %v116_v5 = vld [vmem:[%s1203_s1 + $0x10] sm:$0xff] }
   0x2   :  { %v114_v3 = vld [vmem:[%s1203_s1] sm:$0xff]  ;;  %v115_v4 = vld [vmem:[%s1203_s1 + $0x8] sm:$0xff]  ;;  %972 = vset.pattern.permute.xlu2 %v987_v2  ;;  %189 = vmatpush.bf16.msra.mxu0 %v957_v0  ;;  %v117_v6 = vld [vmem:[%s1203_s1 + $0x18] sm:$0xff]  ;;  %v1087_v27 = vand.u32 127, %v707_v25 }
   0x3   :  { %958 = vmatpush.bf16.msra.mxu1 %v957_v0  ;;  %v722_v7 = vld [vmem:[%s1204_s0 + $0x68] sm:$0xff]  ;;  %v724_v8 = vld [vmem:[%s1204_s0 + $0x78] sm:$0xff]  ;;  %959 = vmatpush.bf16.msra.mxu2 %v957_v0  ;;  %v130_v10 = vpack.c.bf16 %v115_v4, %v114_v3  ;;  %v131_v11 = vpack.c.bf16 %v117_v6, %v116_v5  ;;  %v721_v12 = vld [vmem:[%s1204_s0 + $0x60] sm:$0xff] }
   0x4   :  { %765 = vperm.xlu1 %971, %v722_v7   ;;  %771 = vperm.xlu0 %970, %v724_v8   ;;  %v720_v9 = vld [vmem:[%s1204_s0 + $0x58] sm:$0xff]  ;;  %v723_v13 = vld [vmem:[%s1204_s0 + $0x70] sm:$0xff]  ;;  %v717_v14 = vld [vmem:[%s1204_s0 + $0x40] sm:$0xff] }
   0x5   :  { %759 = vperm.xlu2 %972, %v720_v9   ;;  %960 = vmatpush.bf16.msra.mxu3 %v957_v0  ;;  %v719_v15 = vld [vmem:[%s1204_s0 + $0x50] sm:$0xff]  ;;  %v713_v16 = vld [vmem:[%s1204_s0 + $0x20] sm:$0xff]  ;;  %v716_v17 = vld [vmem:[%s1204_s0 + $0x38] sm:$0xff] }
   0x6   :  { %190 = vmatpush.bf16.msra.mxu0 %v956_v1  ;;  %v718_v18 = vld [vmem:[%s1204_s0 + $0x48] sm:$0xff]  ;;  %v715_v19 = vld [vmem:[%s1204_s0 + $0x30] sm:$0xff]  ;;  %v712_v21 = vld [vmem:[%s1204_s0 + $0x18] sm:$0xff] }
   0x7   :  { %961 = vmatpush.bf16.msra.mxu1 %v956_v1  ;;  %962 = vmatpush.bf16.msra.mxu2 %v956_v1  ;;  %v714_v20 = vld [vmem:[%s1204_s0 + $0x28] sm:$0xff]  ;;  %v711_v22 = vld [vmem:[%s1204_s0 + $0x10] sm:$0xff]  ;;  %v973_v34 = vld [vmem:[%s1205_s3] ss:$0 sm:$0xff] }
   0x9   :  { %900 = vmatmul.msk.bf16.vlgmr.msra.gmra.mxu0 %vm158_vm0, %v130_v10  ;;  %963 = vmatpush.bf16.msra.mxu3 %v956_v1 }
   0xa   :  { %901 = vmatmul.msk.bf16.vlgmr.msra.gmra.mxu1 %vm158_vm0, %v131_v11 }
   0xc   :  { %762 = vperm.xlu1 %971, %v721_v12   ;;  %768 = vperm.xlu0 %970, %v723_v13   ;;  %v974_v12 = vld [vmem:[%s1206_s4] ss:$0 sm:$0xff] }
   0xd   :  { %750 = vperm.xlu2 %972, %v717_v14  }
  0x14   :  { %756 = vperm.xlu1 %971, %v719_v15   ;;  %738 = vperm.xlu0 %970, %v713_v16  }
  0x15   :  { %747 = vperm.xlu2 %972, %v716_v17  }
  0x1c   :  { %753 = vperm.xlu1 %971, %v718_v18  }
  0x1d   :  { %744 = vperm.xlu2 %972, %v715_v19  }
  0x25   :  { %741 = vperm.xlu2 %972, %v714_v20  }
  0x2d   :  { %735 = vperm.xlu2 %972, %v712_v21  }
  0x35   :  { %732 = vperm.xlu2 %972, %v711_v22  }
  0x5f   :  { %v760_v23 = vpop.permute.xlu2 %759 }
  0x60   :  { %vm784_vm5 = vcmp.eq.s32.totalorder %v760_v23, %v1087_v27 }
  0x67   :  { %v751_v24 = vpop.permute.xlu2 %750 }
  0x68   :  { %vm781_vm7 = vcmp.eq.s32.totalorder %v751_v24, %v1087_v27 }
  0x6f   :  { %v748_v26 = vpop.permute.xlu2 %747 }
  0x70   :  { %vm780_vm9 = vcmp.eq.s32.totalorder %v748_v26, %v1087_v27 }
  0x76   :  { %v766_v28 = vpop.permute.xlu1 %765  ;;  %v772_v29 = vpop.permute.xlu0 %771 }
  0x77   :  { %vm788_vm1 = vcmp.eq.s32.totalorder %v772_v29, %v1087_v27  ;;  %v745_v31 = vpop.permute.xlu2 %744  ;;  %vm786_vm2 = vcmp.eq.s32.totalorder %v766_v28, %v1087_v27 }
  0x78   :  { %940 = vmatpush.msk.msrb.mxu1 %vm788_vm1, %v988_v30  ;;  %vm779_vm10 = vcmp.eq.s32.totalorder %v745_v31, %v1087_v27 }
  0x7e   :  { %v763_v32 = vpop.permute.xlu1 %762  ;;  %v769_v33 = vpop.permute.xlu0 %768 }
  0x7f   :  { %vm787_vm3 = vcmp.eq.s32.totalorder %v769_v33, %v1087_v27  ;;  %vm785_vm4 = vcmp.eq.s32.totalorder %v763_v32, %v1087_v27  ;;  %v742_v35 = vpop.permute.xlu2 %741 }
  0x80   :  { %941 = vmatpush.msk.msrb.mxu1 %vm787_vm3, %v988_v30  ;;  %vm778_vm11 = vcmp.eq.s32.totalorder %v742_v35, %v1087_v27  ;;  %v710_v35 = vld [vmem:[%s1204_s0 + $0x8] sm:$0xff] }
  0x82   :  { %942 = vmatpush.msk.msrb.mxu1 %vm786_vm2, %v988_v30 }
  0x84   :  { %943 = vmatpush.msk.msrb.mxu1 %vm785_vm4, %v988_v30 }
  0x86   :  { %v757_v36 = vpop.permute.xlu1 %756  ;;  %944 = vmatpush.msk.msrb.mxu1 %vm784_vm5, %v988_v30  ;;  %v192_v37 = vpop.f32.mrf.mxu0 }
  0x87   :  { %v197_v38 = vpop.f32.mrf.mxu1  ;;  %vm783_vm6 = vcmp.eq.s32.totalorder %v757_v36, %v1087_v27  ;;  %v1103_v39 = vadd.f32 %v973_v34, %v192_v37  ;;  %v736_v44 = vpop.permute.xlu2 %735  ;;  %v709_v36 = vld [vmem:[%s1204_s0] sm:$0xff]  ;;  %v120_v37 = vld [vmem:[%s1203_s1 + $0x30] sm:$0xff] }
  0x88   :  { %v1105_v40 = vadd.f32 %v973_v34, %v197_v38  ;;  %945 = vmatpush.msk.msrb.mxu1 %vm783_vm6, %v988_v30  ;;  %v739_v53 = vpop.permute.xlu0 %738  ;;  %vm776_vm13 = vcmp.eq.s32.totalorder %v736_v44, %v1087_v27  ;;  %v121_v38 = vld [vmem:[%s1203_s1 + $0x38] sm:$0xff]  ;;  %v118_v44 = vld [vmem:[%s1203_s1 + $0x20] sm:$0xff] }
  0x89   :  { %v908_v41 = vmul.f32 -1.442695, %v1103_v39  ;;  %vm777_vm12 = vcmp.eq.s32.totalorder %v739_v53, %v1087_v27  ;;  %v128_v53 = vld [vmem:[%s1203_s1 + $0x70] sm:$0xff] }
  0x8a   :  { %v910_v42 = vmul.f32 -1.442695, %v1105_v40 }
  0x8b   :  { %975 = vpow2.f32 %v908_v41  ;;  %v126_v41 = vld [vmem:[%s1203_s1 + $0x60] sm:$0xff] }
  0x8c   :  { %977 = vpow2.f32 %v910_v42  ;;  %v127_v42 = vld [vmem:[%s1203_s1 + $0x68] sm:$0xff] }
  0x8e   :  { %v754_v43 = vpop.permute.xlu1 %753  ;;  %v194_v45 = vpop.f32.mrf.mxu0 }
  0x8f   :  { %v199_v46 = vpop.f32.mrf.mxu1  ;;  %vm782_vm8 = vcmp.eq.s32.totalorder %v754_v43, %v1087_v27  ;;  %v1112_v47 = vadd.f32 %v973_v34, %v194_v45  ;;  %v733_v54 = vpop.permute.xlu2 %732  ;;  %v136_v43 = vpack.c.bf16 %v127_v42, %v126_v41  ;;  %v119_v45 = vld [vmem:[%s1203_s1 + $0x28] sm:$0xff] }
  0x90   :  { %946 = vmatpush.msk.msrb.mxu1 %vm782_vm8, %v988_v30  ;;  %vm775_vm14 = vcmp.eq.s32.totalorder %v733_v54, %v1087_v27  ;;  %vm572_vm8 = vcmask 130048   ;;  %v129_v54 = vld [vmem:[%s1203_s1 + $0x78] sm:$0xff] }
  0x91   :  { %v976_v48 = vpop.eup %975  ;;  %v909_v49 = vmul.f32 -1.442695, %v1112_v47  ;;  %906 = vmatmul.msk.bf16.vlgmr.msra.gmra.mxu3 %vm158_vm0, %v136_v43 }
  0x92   :  { %947 = vmatpush.msk.msrb.mxu1 %vm781_vm7, %v988_v30  ;;  %v978_v50 = vpop.eup %977  ;;  %v280_v51 = vadd.f32 1.0, %v976_v48 }
  0x93   :  { %v282_v52 = vadd.f32 1.0, %v978_v50  ;;  %979 = vpow2.f32 %v909_v49 }
  0x94   :  { %948 = vmatpush.msk.msrb.mxu1 %vm780_vm9, %v988_v30  ;;  %981 = vrcp.f32 %v280_v51  ;;  %v307_v62 = vand.u32 2147483648, %v280_v51  ;;  %v305_v3 = vand.u32 2147483647, %v280_v51  ;;  %vm301_vm3 = vweird.f32 %v280_v51 }
  0x95   :  { %983 = vrcp.f32 %v282_v52  ;;  %v337_v63 = vand.u32 2147483648, %v282_v52  ;;  %vm331_vm15 = vweird.f32 %v282_v52  ;;  %v335_v1 = vand.u32 2147483647, %v282_v52 }
  0x96   :  { %949 = vmatpush.msk.msrb.mxu1 %vm779_vm10, %v988_v30  ;;  %v308_v8 = vor.u32 1.1754944e-38, %v307_v62  ;;  %vm306_vm7 = vcmp.eq.f32.partialorder %v305_v3, 8.507059e+37 }
  0x97   :  { %v338_v6 = vor.u32 1.1754944e-38, %v337_v63  ;;  %vm336_vm6 = vcmp.eq.f32.partialorder %v335_v1, 8.507059e+37 }
  0x98   :  { %950 = vmatpush.msk.msrb.mxu1 %vm778_vm11, %v988_v30 }
  0x99   :  { %v980_v55 = vpop.eup %979 }
  0x9a   :  { %951 = vmatpush.msk.msrb.mxu1 %vm777_vm12, %v988_v30  ;;  %v982_v56 = vpop.eup %981  ;;  %v281_v57 = vadd.f32 1.0, %v980_v55 }
  0x9b   :  { %v984_v58 = vpop.eup %983  ;;  %v297_v59 = vmul.f32 %v982_v56, %v280_v51  ;;  %vm302_vm2 = vweird.f32 %v982_v56  ;;  %v122_v51 = vld [vmem:[%s1203_s1 + $0x40] sm:$0xff] }
  0x9c   :  { %952 = vmatpush.msk.msrb.mxu1 %vm776_vm13, %v988_v30  ;;  %v327_v60 = vmul.f32 %v984_v58, %v282_v52  ;;  %985 = vrcp.f32 %v281_v57  ;;  %vm332_vm1 = vweird.f32 %v984_v58  ;;  %vm303_vm5 = vmor %vm301_vm3, %vm302_vm2  ;;  %v322_v19 = vand.u32 2147483648, %v281_v57  ;;  %v123_v52 = vld [vmem:[%s1203_s1 + $0x48] sm:$0xff] }
  0x9d   :  { %v298_v61 = vsub.f32 1.0, %v297_v59  ;;  %vm333_vm4 = vmor %vm331_vm15, %vm332_vm1  ;;  %v320_v21 = vand.u32 2147483647, %v281_v57  ;;  %vm316_vm10 = vweird.f32 %v281_v57  ;;  %v134_v55 = vpack.c.bf16 %v123_v52, %v122_v51 }
  0x9e   :  { %953 = vmatpush.msk.msrb.mxu1 %vm775_vm14, %v988_v30  ;;  %v328_v0 = vsub.f32 1.0, %v327_v60  ;;  %v323_v26 = vor.u32 1.1754944e-38, %v322_v19  ;;  %v124_v60 = vld [vmem:[%s1203_s1 + $0x50] sm:$0xff] }
  0x9f   :  { %v299_v2 = vmul.f32 %v982_v56, %v298_v61  ;;  %vm321_vm12 = vcmp.eq.f32.partialorder %v320_v21, 8.507059e+37  ;;  %v125_v61 = vld [vmem:[%s1203_s1 + $0x58] sm:$0xff] }
  0xa0   :  { %v329_v4 = vmul.f32 %v984_v58, %v328_v0  ;;  %v135_v63 = vpack.c.bf16 %v125_v61, %v124_v60 }
  0xa1   :  { %v300_v5 = vadd.f32 %v982_v56, %v299_v2 }
  0xa2   :  { %v986_v7 = vpop.eup %985  ;;  %v330_v9 = vadd.f32 %v984_v58, %v329_v4 }
  0xa3   :  { %v304_v10 = vsel %vm303_vm5, %v982_v56, %v300_v5  ;;  %v312_v11 = vmul.f32 %v986_v7, %v281_v57  ;;  %vm317_vm9 = vweird.f32 %v986_v7  ;;  %v137_v56 = vpack.c.bf16 %v129_v54, %v128_v53 }
  0xa4   :  { %v309_v13 = vsel %vm306_vm7, %v308_v8, %v304_v10  ;;  %v334_v14 = vsel %vm333_vm4, %v984_v58, %v330_v9  ;;  %vm318_vm11 = vmor %vm316_vm10, %vm317_vm9 }
  0xa5   :  { %v536_v15 = vmul.f32 %v309_v13, %v1103_v39  ;;  %v339_v16 = vsel %vm336_vm6, %v338_v6, %v334_v14  ;;  %v313_v17 = vsub.f32 1.0, %v312_v11  ;;  %v622_v39 = vstv %s1207_s5  ;;  %907 = vmatmul.msk.bf16.gmra.mxu3 %vm158_vm0, %v137_v56 }
  0xa6   :  { %v538_v18 = vmul.f32 %v339_v16, %v1105_v40  ;;  %v133_v40 = vpack.c.bf16 %v121_v38, %v120_v37  ;;  %v989_v6 = vmov 0.0  }
  0xa7   :  { %v314_v20 = vmul.f32 %v986_v7, %v313_v17  ;;  %v556_v22 = vmul.f32 %v974_v12, %v536_v15  ;;  %113 = vst [vmem:[%s1208_s6] sm:$0x1] %v989_v6 }
  0xa8   :  { %v558_v23 = vmul.f32 %v974_v12, %v538_v18  ;;  %903 = vmatmul.msk.bf16.vlgmr.msra.gmra.mxu2 %vm158_vm0, %v133_v40 }
  0xa9   :  { %v315_v24 = vadd.f32 %v986_v7, %v314_v20  ;;  %v573_v25 = vsel %vm572_vm8, %v556_v22, 0.0 }
  0xaa   :  { %v579_v28 = vsel %vm572_vm8, %v558_v23, 0.0  ;;  %574 = vadd.xlane.f32.xlu2 %v573_v25 }
  0xab   :  { %v319_v29 = vsel %vm318_vm11, %v986_v7, %v315_v24  ;;  %580 = vadd.xlane.f32.xlu1 %v579_v28 }
  0xac   :  { %v324_v31 = vsel %vm321_vm12, %v323_v26, %v319_v29 }
  0xad   :  { %v537_v32 = vmul.f32 %v324_v31, %v1112_v47  ;;  %v132_v47 = vpack.c.bf16 %v119_v45, %v118_v44 }
  0xaf   :  { %v557_v33 = vmul.f32 %v974_v12, %v537_v32  ;;  %902 = vmatmul.msk.bf16.gmra.mxu1 %vm158_vm0, %v132_v47  ;;  %v873_v12 = vld [vmem:[%s1208_s6] sm:$0x1] }
  0xb1   :  { %v576_v34 = vsel %vm572_vm8, %v557_v33, 0.0 }
  0xb2   :  { %577 = vadd.xlane.f32.xlu0 %v576_v34 }
  0xb8   :  { %904 = vmatmul.msk.bf16.gmra.mxu2 %vm158_vm0, %v134_v55 }
  0xc4   :  { %729 = vperm.xlu1 %971, %v710_v35  }
  0xc6   :  { %726 = vperm.xlu0 %970, %v709_v36  }
  0xc8   :  { %905 = vmatmul.msk.bf16.gmra.mxu2 %vm158_vm0, %v135_v63 }
 0x114   :  { %v222_v2 = vpop.f32.mrf.mxu3 }
 0x11c   :  { %v224_v5 = vpop.f32.mrf.mxu3 }
 0x11d   :  { %v575_v46 = vpop.xlane.xlu2 %574 }
 0x11e   :  { %v623_v48 = vadd.f32 %v622_v39, %v575_v46  ;;  %v581_v57 = vpop.xlane.xlu1 %580 }
 0x11f   :  { %v625_v58 = vadd.f32 %v622_v39, %v581_v57 }
 0x120   :  { %821 = vxpose.xlu2.b32.start [1/3] (short) (narrow) %v623_v48, 8 }
 0x125   :  { %v578_v49 = vpop.xlane.xlu0 %577 }
 0x126   :  { %v624_v50 = vadd.f32 %v622_v39, %v578_v49 }
 0x128   :  { %822 = vxpose.xlu2.b32.cont [2/3] (short) (narrow) %v624_v50, 8  ;;  %v227_v8 = vpop.f32.mrf.mxu3 }
 0x12b   :  { %v207_v1 = vpop.f32.mrf.mxu2 }
 0x12c   :  { %v202_v0 = vpop.f32.mrf.mxu1 }
 0x130   :  { %823 = vxpose.xlu2.b32.end [3/3] (short) (narrow) %v625_v58, 8  ;;  %v229_v10 = vpop.f32.mrf.mxu3 }
 0x133   :  { %v209_v4 = vpop.f32.mrf.mxu2 }
 0x134   :  { %v204_v3 = vpop.f32.mrf.mxu1 }
 0x136   :  { %v730_v59 = vpop.permute.xlu1 %729 }
 0x137   :  { %vm774_vm13 = vcmp.eq.s32.totalorder %v730_v59, %v1087_v27 }
 0x138   :  { %954 = vmatpush.msk.msrb.mxu1 %vm774_vm13, %v988_v30  ;;  %v727_v62 = vpop.permute.xlu0 %726 }
 0x139   :  { %vm773_vm14 = vcmp.eq.s32.totalorder %v727_v62, %v1087_v27 }
 0x13a   :  { %955 = vmatpush.msk.msrb.mxu1 %vm773_vm14, %v988_v30 }
 0x13b   :  { %v212_v7 = vpop.f32.mrf.mxu2 }
 0x143   :  { %v214_v9 = vpop.f32.mrf.mxu2 }
 0x14b   :  { %v217_v30 = vpop.f32.mrf.mxu2 }
 0x153   :  { %v219_v11 = vpop.f32.mrf.mxu2 }
 0x1b9   :  { %v837_v27 = vpop.trf.xlu2 }
 0x1ba   :  { %869 = vmatmul.f32.vlgmr.msrb.gmra.mxu1 %v837_v27 }
 0x237   :  { %v870_v13 = vpop.f32.mrf.mxu1 }
 0x238   :  { %v874_v14 = vadd.f32 %v873_v12, %v870_v13 }
 0x23a   :  { %875 = vst [vmem:[%s1208_s6] sm:$0x1] %v874_v14 }

</bundles_post_ra>
